<compile_context>
chip_gen: v6e
topology: v6e:2x2x1
jax: 0.10.0
libtpu: 0.0.40
codegen_flags: <defaults>
</compile_context>

<pallas_src>
import functools

import jax
import jax.numpy as jnp
from jax.experimental import pallas as pl
from jax.experimental.pallas import tpu as pltpu

EPS = 1e-5
LANE = 128
H1, H2, H3 = 500, 200, 2          # layer widths from the PyTorch module
H1P, H2P, H3P = 512, 256, 128     # lane-padded widths (multiples of 128)


def _pad_last(a, target):
    pad = target - a.shape[-1]
    if pad == 0:
        return a
    return jnp.pad(a, [(0, 0)] * (a.ndim - 1) + [(0, pad)])


def _pad2(a, rows, cols):
    pr, pc = rows - a.shape[0], cols - a.shape[1]
    if pr == 0 and pc == 0:
        return a
    return jnp.pad(a, ((0, pr), (0, pc)))


@functools.lru_cache(maxsize=None)
def _vmem_limit_bytes():
    # Per-generation VMEM budget: ~75% of physical, capped below 110 MiB.
    #   v5e/v6e: 128 MiB physical -> ~96 MiB   |   v7x: 64 MiB -> 48 MiB
    try:
        cap = int(pltpu.get_tpu_info().vmem_capacity_bytes)
    except Exception:
        cap = 64 * 1024 * 1024
    return min((cap * 3) // 4, 110 * 1024 * 1024)


def _batchnorm_affine(x, gamma, beta):
    # Training-mode BatchNorm1d with per-call batch statistics (biased var).
    # Centered two-pass variance (robust for post-ReLU activations), then the
    # normalize + affine is folded into a single per-column scale/shift.
    # Padded lanes: gamma = beta = 0 -> output stays exactly zero.
    mu = jnp.mean(x, axis=0, keepdims=True)
    xc = x - mu
    var = jnp.mean(xc * xc, axis=0, keepdims=True)
    s = gamma * jax.lax.rsqrt(var + EPS)
    return xc * s + beta


def classifier_kernel(
    x_ref,                    # (B, D)   unpadded feature dim
    g1_ref, be1_ref,          # bn1 gamma/beta  (1, D)
    w1_ref, b1_ref,           # fc1  (D, 512), (1, 512)
    g2_ref, be2_ref,          # bn2 gamma/beta  (1, 512)
    w2_ref, b2_ref,           # fc2  (512, 256), (1, 256)
    g3_ref, be3_ref,          # bn3 gamma/beta  (1, 256)
    w3_ref, b3_ref,           # fc3  (256, 128), (1, 128)
    o_ref,                    # out  (B, 128)  (sliced to (B, 2) in wrapper)
):
    h = _batchnorm_affine(x_ref[...], g1_ref[...], be1_ref[...])
    h = jnp.dot(h, w1_ref[...], preferred_element_type=jnp.float32) + b1_ref[...]
    h = jnp.maximum(h, 0.0)

    h = _batchnorm_affine(h, g2_ref[...], be2_ref[...])
    h = jnp.dot(h, w2_ref[...], preferred_element_type=jnp.float32) + b2_ref[...]
    h = jnp.maximum(h, 0.0)

    h = _batchnorm_affine(h, g3_ref[...], be3_ref[...])
    h = jnp.dot(h, w3_ref[...], preferred_element_type=jnp.float32) + b3_ref[...]
    h = jnp.maximum(h, 0.0)

    o_ref[...] = h.astype(o_ref.dtype)


def prepare_params(params):
    """Pad parameters to lane multiples ONCE; reuse the result across calls.

    Padded gamma/beta/bias/weight entries are all ZERO so padded lanes stay
    exactly zero through bn -> matmul -> relu.  The input feature dim D is
    left unpadded (full-array blocks are exempt from the (8,128) rule).
    """
    return (
        params["bn1_gamma"], params["bn1_beta"],
        _pad2(params["w1"], params["w1"].shape[0], H1P), _pad_last(params["b1"], H1P),
        _pad_last(params["bn2_gamma"], H1P), _pad_last(params["bn2_beta"], H1P),
        _pad2(params["w2"], H1P, H2P), _pad_last(params["b2"], H2P),
        _pad_last(params["bn3_gamma"], H2P), _pad_last(params["bn3_beta"], H2P),
        _pad2(params["w3"], H2P, H3P), _pad_last(params["b3"], H3P),
    )


@jax.jit
def _classifier_call(x, padded_params):
    B = x.shape[0]
    vmem_spec = pl.BlockSpec(memory_space=pltpu.MemorySpace.VMEM)
    out_padded = pl.pallas_call(
        classifier_kernel,
        out_shape=jax.ShapeDtypeStruct((B, H3P), jnp.float32),
        in_specs=[vmem_spec] * (1 + len(padded_params)),
        out_specs=vmem_spec,
        compiler_params=pltpu.CompilerParams(vmem_limit_bytes=_vmem_limit_bytes()),
    )(x, *padded_params)
    return out_padded[:, :H3]


def neural_net_classifier(x, padded_params):
    """x: (B, D) float32.  padded_params: output of prepare_params()."""
    return _classifier_call(x, padded_params)


def init_params(key, len_input):
    """Deterministic synthetic parameters following the module's shapes.

    nn.Linear(in, out): weight (out, in), bias (out,) -> stored transposed as
    (in, out) / (1, out).  nn.BatchNorm1d(n): gamma ones, beta zeros, (1, n).
    """
    def linear(k, fan_in, fan_out):
        kw, kb = jax.random.split(k)
        bound = 1.0 / jnp.sqrt(fan_in)
        w = jax.random.uniform(kw, (fan_in, fan_out), jnp.float32, -bound, bound)
        b = jax.random.uniform(kb, (1, fan_out), jnp.float32, -bound, bound)
        return w, b

    k1, k2, k3 = jax.random.split(key, 3)
    w1, b1 = linear(k1, len_input, H1)
    w2, b2 = linear(k2, H1, H2)
    w3, b3 = linear(k3, H2, H3)
    return {
        "bn1_gamma": jnp.ones((1, len_input), jnp.float32),
        "bn1_beta": jnp.zeros((1, len_input), jnp.float32),
        "bn2_gamma": jnp.ones((1, H1), jnp.float32),
        "bn2_beta": jnp.zeros((1, H1), jnp.float32),
        "bn3_gamma": jnp.ones((1, H2), jnp.float32),
        "bn3_beta": jnp.zeros((1, H2), jnp.float32),
        "w1": w1, "b1": b1,
        "w2": w2, "b2": b2,
        "w3": w3, "b3": b3,
    }


def _reference(x, p):
    def bn(h, g, b):
        mu = jnp.mean(h, axis=0, keepdims=True)
        var = jnp.mean((h - mu) ** 2, axis=0, keepdims=True)
        return (h - mu) / jnp.sqrt(var + EPS) * g + b

    h = bn(x, p["bn1_gamma"], p["bn1_beta"])
    h = jnp.maximum(h @ p["w1"] + p["b1"], 0.0)
    h = bn(h, p["bn2_gamma"], p["bn2_beta"])
    h = jnp.maximum(h @ p["w2"] + p["b2"], 0.0)
    h = bn(h, p["bn3_gamma"], p["bn3_beta"])
    h = jnp.maximum(h @ p["w3"] + p["b3"], 0.0)
    return h


if __name__ == "__main__":
    key = jax.random.PRNGKey(0)
    k_x, k_p = jax.random.split(key)

    B, LEN_INPUT = 8, 32
    x = jax.random.normal(k_x, (B, LEN_INPUT), jnp.float32)
    params = init_params(k_p, LEN_INPUT)

    # Pad once, outside the per-call path.
    padded_params = jax.tree_util.tree_map(jax.block_until_ready,
                                           prepare_params(params))

    out = neural_net_classifier(x, padded_params)
    out = jax.block_until_ready(out)

    ref = _reference(x, params)
    assert out.shape == (B, 2), out.shape
    assert jnp.allclose(out, ref, atol=1e-4, rtol=1e-4), (
        f"max abs diff {jnp.max(jnp.abs(out - ref))}"
    )
    print("KERNEL_OK")
</pallas_src>

<mosaic_0001>
module attributes {stable_mosaic.version = 11 : i64} {
  func.func @classifier_kernel(%arg0: memref<8x32xf32, #tpu.memory_space<vmem>>, %arg1: memref<1x32xf32, #tpu.memory_space<vmem>>, %arg2: memref<1x32xf32, #tpu.memory_space<vmem>>, %arg3: memref<32x512xf32, #tpu.memory_space<vmem>>, %arg4: memref<1x512xf32, #tpu.memory_space<vmem>>, %arg5: memref<1x512xf32, #tpu.memory_space<vmem>>, %arg6: memref<1x512xf32, #tpu.memory_space<vmem>>, %arg7: memref<512x256xf32, #tpu.memory_space<vmem>>, %arg8: memref<1x256xf32, #tpu.memory_space<vmem>>, %arg9: memref<1x256xf32, #tpu.memory_space<vmem>>, %arg10: memref<1x256xf32, #tpu.memory_space<vmem>>, %arg11: memref<256x128xf32, #tpu.memory_space<vmem>>, %arg12: memref<1x128xf32, #tpu.memory_space<vmem>>, %arg13: memref<8x128xf32, #tpu.memory_space<vmem>>) attributes {dimension_semantics = [], scalar_prefetch = 0 : i64, scratch_operands = 0 : i64, tpu.core_type = #tpu.core_type<tc>} {
    %c0 = arith.constant 0 : index
    %c0_0 = arith.constant 0 : index
    %0 = vector.load %arg0[%c0, %c0_0] : memref<8x32xf32, #tpu.memory_space<vmem>>, vector<8x32xf32>
    %c0_1 = arith.constant 0 : index
    %c0_2 = arith.constant 0 : index
    %1 = vector.load %arg1[%c0_1, %c0_2] : memref<1x32xf32, #tpu.memory_space<vmem>>, vector<1x32xf32>
    %c0_3 = arith.constant 0 : index
    %c0_4 = arith.constant 0 : index
    %2 = vector.load %arg2[%c0_3, %c0_4] : memref<1x32xf32, #tpu.memory_space<vmem>>, vector<1x32xf32>
    %cst = arith.constant dense<0.000000e+00> : vector<32xf32>
    %3 = vector.multi_reduction <add>, %0, %cst [0] : vector<8x32xf32> to vector<32xf32>
    %4 = vector.shape_cast %3 : vector<32xf32> to vector<1x32xf32>
    %cst_5 = arith.constant 8.000000e+00 : f32
    %5 = vector.broadcast %cst_5 : f32 to vector<1x32xf32>
    %6 = arith.divf %4, %5 : vector<1x32xf32>
    %7 = vector.broadcast %6 : vector<1x32xf32> to vector<8x32xf32>
    %8 = arith.subf %0, %7 : vector<8x32xf32>
    %9 = arith.mulf %8, %8 : vector<8x32xf32>
    %cst_6 = arith.constant dense<0.000000e+00> : vector<32xf32>
    %10 = vector.multi_reduction <add>, %9, %cst_6 [0] : vector<8x32xf32> to vector<32xf32>
    %11 = vector.shape_cast %10 : vector<32xf32> to vector<1x32xf32>
    %cst_7 = arith.constant 8.000000e+00 : f32
    %12 = vector.broadcast %cst_7 : f32 to vector<1x32xf32>
    %13 = arith.divf %11, %12 : vector<1x32xf32>
    %cst_8 = arith.constant 9.99999974E-6 : f32
    %14 = vector.broadcast %cst_8 : f32 to vector<1x32xf32>
    %15 = arith.addf %13, %14 : vector<1x32xf32>
    %16 = math.rsqrt %15 : vector<1x32xf32>
    %17 = arith.mulf %1, %16 : vector<1x32xf32>
    %18 = vector.broadcast %17 : vector<1x32xf32> to vector<8x32xf32>
    %19 = arith.mulf %8, %18 : vector<8x32xf32>
    %20 = vector.broadcast %2 : vector<1x32xf32> to vector<8x32xf32>
    %21 = arith.addf %19, %20 : vector<8x32xf32>
    %c0_9 = arith.constant 0 : index
    %c0_10 = arith.constant 0 : index
    %22 = vector.load %arg3[%c0_9, %c0_10] : memref<32x512xf32, #tpu.memory_space<vmem>>, vector<32x512xf32>
    %cst_11 = arith.constant dense<0.000000e+00> : vector<8x512xf32>
    %23 = tpu.matmul %21, %22, %cst_11 {dimension_numbers = #tpu.dot_dimension_numbers<[1], [0], [0], [1], [0, 0, 1, 1], [], []>} : vector<8x32xf32>, vector<32x512xf32>, vector<8x512xf32> -> vector<8x512xf32>
    %c0_12 = arith.constant 0 : index
    %c0_13 = arith.constant 0 : index
    %24 = vector.load %arg4[%c0_12, %c0_13] : memref<1x512xf32, #tpu.memory_space<vmem>>, vector<1x512xf32>
    %25 = vector.broadcast %24 : vector<1x512xf32> to vector<8x512xf32>
    %26 = arith.addf %23, %25 : vector<8x512xf32>
    %cst_14 = arith.constant 0.000000e+00 : f32
    %27 = vector.broadcast %cst_14 : f32 to vector<8x512xf32>
    %28 = arith.maximumf %26, %27 : vector<8x512xf32>
    %c0_15 = arith.constant 0 : index
    %c0_16 = arith.constant 0 : index
    %29 = vector.load %arg5[%c0_15, %c0_16] : memref<1x512xf32, #tpu.memory_space<vmem>>, vector<1x512xf32>
    %c0_17 = arith.constant 0 : index
    %c0_18 = arith.constant 0 : index
    %30 = vector.load %arg6[%c0_17, %c0_18] : memref<1x512xf32, #tpu.memory_space<vmem>>, vector<1x512xf32>
    %cst_19 = arith.constant dense<0.000000e+00> : vector<512xf32>
    %31 = vector.multi_reduction <add>, %28, %cst_19 [0] : vector<8x512xf32> to vector<512xf32>
    %32 = vector.shape_cast %31 : vector<512xf32> to vector<1x512xf32>
    %cst_20 = arith.constant 8.000000e+00 : f32
    %33 = vector.broadcast %cst_20 : f32 to vector<1x512xf32>
    %34 = arith.divf %32, %33 : vector<1x512xf32>
    %35 = vector.broadcast %34 : vector<1x512xf32> to vector<8x512xf32>
    %36 = arith.subf %28, %35 : vector<8x512xf32>
    %37 = arith.mulf %36, %36 : vector<8x512xf32>
    %cst_21 = arith.constant dense<0.000000e+00> : vector<512xf32>
    %38 = vector.multi_reduction <add>, %37, %cst_21 [0] : vector<8x512xf32> to vector<512xf32>
    %39 = vector.shape_cast %38 : vector<512xf32> to vector<1x512xf32>
    %cst_22 = arith.constant 8.000000e+00 : f32
    %40 = vector.broadcast %cst_22 : f32 to vector<1x512xf32>
    %41 = arith.divf %39, %40 : vector<1x512xf32>
    %cst_23 = arith.constant 9.99999974E-6 : f32
    %42 = vector.broadcast %cst_23 : f32 to vector<1x512xf32>
    %43 = arith.addf %41, %42 : vector<1x512xf32>
    %44 = math.rsqrt %43 : vector<1x512xf32>
    %45 = arith.mulf %29, %44 : vector<1x512xf32>
    %46 = vector.broadcast %45 : vector<1x512xf32> to vector<8x512xf32>
    %47 = arith.mulf %36, %46 : vector<8x512xf32>
    %48 = vector.broadcast %30 : vector<1x512xf32> to vector<8x512xf32>
    %49 = arith.addf %47, %48 : vector<8x512xf32>
    %c0_24 = arith.constant 0 : index
    %c0_25 = arith.constant 0 : index
    %50 = vector.load %arg7[%c0_24, %c0_25] : memref<512x256xf32, #tpu.memory_space<vmem>>, vector<512x256xf32>
    %cst_26 = arith.constant dense<0.000000e+00> : vector<8x256xf32>
    %51 = tpu.matmul %49, %50, %cst_26 {dimension_numbers = #tpu.dot_dimension_numbers<[1], [0], [0], [1], [0, 0, 1, 1], [], []>} : vector<8x512xf32>, vector<512x256xf32>, vector<8x256xf32> -> vector<8x256xf32>
    %c0_27 = arith.constant 0 : index
    %c0_28 = arith.constant 0 : index
    %52 = vector.load %arg8[%c0_27, %c0_28] : memref<1x256xf32, #tpu.memory_space<vmem>>, vector<1x256xf32>
    %53 = vector.broadcast %52 : vector<1x256xf32> to vector<8x256xf32>
    %54 = arith.addf %51, %53 : vector<8x256xf32>
    %cst_29 = arith.constant 0.000000e+00 : f32
    %55 = vector.broadcast %cst_29 : f32 to vector<8x256xf32>
    %56 = arith.maximumf %54, %55 : vector<8x256xf32>
    %c0_30 = arith.constant 0 : index
    %c0_31 = arith.constant 0 : index
    %57 = vector.load %arg9[%c0_30, %c0_31] : memref<1x256xf32, #tpu.memory_space<vmem>>, vector<1x256xf32>
    %c0_32 = arith.constant 0 : index
    %c0_33 = arith.constant 0 : index
    %58 = vector.load %arg10[%c0_32, %c0_33] : memref<1x256xf32, #tpu.memory_space<vmem>>, vector<1x256xf32>
    %cst_34 = arith.constant dense<0.000000e+00> : vector<256xf32>
    %59 = vector.multi_reduction <add>, %56, %cst_34 [0] : vector<8x256xf32> to vector<256xf32>
    %60 = vector.shape_cast %59 : vector<256xf32> to vector<1x256xf32>
    %cst_35 = arith.constant 8.000000e+00 : f32
    %61 = vector.broadcast %cst_35 : f32 to vector<1x256xf32>
    %62 = arith.divf %60, %61 : vector<1x256xf32>
    %63 = vector.broadcast %62 : vector<1x256xf32> to vector<8x256xf32>
    %64 = arith.subf %56, %63 : vector<8x256xf32>
    %65 = arith.mulf %64, %64 : vector<8x256xf32>
    %cst_36 = arith.constant dense<0.000000e+00> : vector<256xf32>
    %66 = vector.multi_reduction <add>, %65, %cst_36 [0] : vector<8x256xf32> to vector<256xf32>
    %67 = vector.shape_cast %66 : vector<256xf32> to vector<1x256xf32>
    %cst_37 = arith.constant 8.000000e+00 : f32
    %68 = vector.broadcast %cst_37 : f32 to vector<1x256xf32>
    %69 = arith.divf %67, %68 : vector<1x256xf32>
    %cst_38 = arith.constant 9.99999974E-6 : f32
    %70 = vector.broadcast %cst_38 : f32 to vector<1x256xf32>
    %71 = arith.addf %69, %70 : vector<1x256xf32>
    %72 = math.rsqrt %71 : vector<1x256xf32>
    %73 = arith.mulf %57, %72 : vector<1x256xf32>
    %74 = vector.broadcast %73 : vector<1x256xf32> to vector<8x256xf32>
    %75 = arith.mulf %64, %74 : vector<8x256xf32>
    %76 = vector.broadcast %58 : vector<1x256xf32> to vector<8x256xf32>
    %77 = arith.addf %75, %76 : vector<8x256xf32>
    %c0_39 = arith.constant 0 : index
    %c0_40 = arith.constant 0 : index
    %78 = vector.load %arg11[%c0_39, %c0_40] : memref<256x128xf32, #tpu.memory_space<vmem>>, vector<256x128xf32>
    %cst_41 = arith.constant dense<0.000000e+00> : vector<8x128xf32>
    %79 = tpu.matmul %77, %78, %cst_41 {dimension_numbers = #tpu.dot_dimension_numbers<[1], [0], [0], [1], [0, 0, 1, 1], [], []>} : vector<8x256xf32>, vector<256x128xf32>, vector<8x128xf32> -> vector<8x128xf32>
    %c0_42 = arith.constant 0 : index
    %c0_43 = arith.constant 0 : index
    %80 = vector.load %arg12[%c0_42, %c0_43] : memref<1x128xf32, #tpu.memory_space<vmem>>, vector<1x128xf32>
    %81 = vector.broadcast %80 : vector<1x128xf32> to vector<8x128xf32>
    %82 = arith.addf %79, %81 : vector<8x128xf32>
    %cst_44 = arith.constant 0.000000e+00 : f32
    %83 = vector.broadcast %cst_44 : f32 to vector<8x128xf32>
    %84 = arith.maximumf %82, %83 : vector<8x128xf32>
    %c0_45 = arith.constant 0 : index
    %c0_46 = arith.constant 0 : index
    %85 = vector.load %arg13[%c0_45, %c0_46] : memref<8x128xf32, #tpu.memory_space<vmem>>, vector<8x128xf32>
    tpu.vector_store %arg13[%c0_45, %c0_46], %84 {strides = array<i32>} : memref<8x128xf32, #tpu.memory_space<vmem>>, vector<8x128xf32>,
    return
  }
}

</mosaic_0001>

<bundles_post_ra>
// kernel: _classifier_call.1
= control target key start
LH: loop header
LB: loop body
LE: loop exit
PB: predicated region body
PF: predicated region fallthrough
CT: control target
= control target key end

     0   :  { %18 = vsyncpa [#allocation3], 0  ;;  %s1401_s0 = inlined_call_operand.hbm [shape: f32[8,32], index: 0, kind: input, shape index: {}]   ;;  %s1402_s1 = inlined_call_operand.hbm [shape: f32[1,32], index: 1, kind: input, shape index: {}]   ;;  %s1403_s2 = inlined_call_operand.hbm [shape: f32[1,32], index: 2, kind: input, shape index: {}]   ;;  %s1404_s3 = inlined_call_operand.hbm [shape: f32[32,512], index: 3, kind: input, shape index: {}]   ;;  %s1405_s4 = inlined_call_operand.vmem [shape: f32[1,512], index: 4, kind: input, shape index: {}]   ;;  %s1406_s5 = inlined_call_operand.vmem [shape: f32[1,512], index: 5, kind: input, shape index: {}]   ;;  %s1407_s6 = inlined_call_operand.hbm [shape: f32[1,512], index: 6, kind: input, shape index: {}]   ;;  %s1408_s7 = inlined_call_operand.hbm [shape: f32[512,256], index: 7, kind: input, shape index: {}]   ;;  %s1409_s8 = inlined_call_operand.vmem [shape: f32[1,256], index: 8, kind: input, shape index: {}]   ;;  %s1410_s9 = inlined_call_operand.vmem [shape: f32[1,256], index: 9, kind: input, shape index: {}]   ;;  %s1411_s10 = inlined_call_operand.vmem [shape: f32[1,256], index: 10, kind: input, shape index: {}]   ;;  %s1412_s11 = inlined_call_operand.hbm [shape: f32[256,128], index: 11, kind: input, shape index: {}]   ;;  %s1413_s12 = inlined_call_operand.vmem [shape: f32[1,128], index: 12, kind: input, shape index: {}]   ;;  %s1414_s13 = inlined_call_operand.vmem [shape: f32[8,128], index: 13, kind: output, shape index: {}]  }
   0x1   :  { %19 = vsyncpa [#allocation5], 0 }
   0x2   :  { %20 = vsyncpa [#allocation8], 0 }
   0x3   :  { %21 = vsyncpa [#allocation11], 0  ;;  %s1214_s25 = smov [#allocation4]   ;;  %s1215_s27 = smov [#allocation7]  }
   0x4   :  { %s38_s26 = sshll.u32 %s1214_s25, 4  ;;  %s57_s28 = sshll.u32 %s1215_s27, 4  ;;  %s39_s26 = int_to_ptr.vmem [resolvable:$true] %s38_s26  ;;  %s58_s28 = int_to_ptr.vmem [resolvable:$true] %s57_s28 }
   0x5   :  { %s1074_s29 = scalar_lea.vmem %s39_s26, 16  ;;  %s1078_s30 = scalar_lea.vmem %s39_s26, 32 }
   0x6   :  { %p1075_p0 = scmp.ne.s32.totalorder %s39_s26, %s1074_s29  ;;  %p1079_p1 = scmp.lt.s32.totalorder %s39_s26, %s39_s26 }
   0x7   :  { %p1080_p2 = scmp.lt.s32.totalorder %s1078_s30, %s1074_s29 }
   0x9   :  { %p1081_p3 = por %p1080_p2, %p1079_p1 }
   0xb   :  { %p1082_p4 = pnand %p1081_p3, %p1075_p0 }
   0xd   :  { %1085 = shalt.err (!%p1082_p4)
}
   0xe   :  { %41 = dma.hbm_to_vmem [thread:$0]  %s1402_s1, 16, %s39_s26, [#allocation5]  }
   0xf   :  { %s1094_s16 = scalar_lea.vmem %s58_s28, 2048  ;;  %p1099_p6 = scmp.lt.s32.totalorder %s58_s28, %s58_s28 }
  0x10   :  { %p1095_p5 = scmp.ne.s32.totalorder %s58_s28, %s1094_s16  ;;  %p1100_p7 = scmp.lt.s32.totalorder %s1094_s16, %s1094_s16 }
  0x12   :  { %p1101_p8 = por %p1100_p7, %p1099_p6 }
  0x14   :  { %p1102_p9 = pnand %p1101_p8, %p1095_p5 }
  0x16   :  { %1105 = shalt.err (!%p1102_p9)
}
  0x17   :  { %s1216_s17 = smov 512   ;;  %s1217_s18 = smov 32  }
  0x18   :  { %63 = dma.hbm_to_vmem [thread:$0]  %s1404_s3, 2048, %s58_s28, [#allocation8], %s1216_s17, %s1216_s17, %s1217_s18  }
  0x19   :  { %s1218_s21 = smov [#allocation10]  }
  0x1a   :  { %s83_s22 = sshll.u32 %s1218_s21, 4  ;;  %s84_s22 = int_to_ptr.vmem [resolvable:$true] %s83_s22 }
  0x1b   :  { %s1114_s23 = scalar_lea.vmem %s84_s22, 16384  ;;  %p1119_p11 = scmp.lt.s32.totalorder %s84_s22, %s84_s22 }
  0x1c   :  { %p1115_p10 = scmp.ne.s32.totalorder %s84_s22, %s1114_s23  ;;  %p1120_p12 = scmp.lt.s32.totalorder %s1114_s23, %s1114_s23 }
  0x1e   :  { %p1121_p13 = por %p1120_p12, %p1119_p11 }
  0x20   :  { %p1122_p0 = pnand %p1121_p13, %p1115_p10 }
  0x22   :  { %1125 = shalt.err (!%p1122_p0)
}
  0x23   :  { %s1219_s1 = smov 256   ;;  %s1220_s24 = smov 16  }
  0x24   :  { %89 = dma.hbm_to_vmem [thread:$0]  %s1408_s7, 16384, %s84_s22, [#allocation11], %s1219_s1, %s1219_s1, %s1220_s24  }
  0x25   :  { %s1221_s27 = smov [#allocation2]   ;;  %s1222_s3 = smov [#allocation6]  }
  0x26   :  { %s28_s29 = sshll.u32 %s1221_s27, 4  ;;  %s48_s28 = sshll.u32 %s1222_s3, 4  ;;  %s29_s29 = int_to_ptr.vmem [resolvable:$true] %s28_s29  ;;  %s49_s28 = int_to_ptr.vmem [resolvable:$true] %s48_s28 }
  0x27   :  { %s1134_s30 = scalar_lea.vmem %s29_s29, 128  ;;  %p1139_p2 = scmp.lt.s32.totalorder %s29_s29, %s29_s29 }
  0x28   :  { %p1135_p1 = scmp.ne.s32.totalorder %s29_s29, %s1134_s30  ;;  %p1140_p3 = scmp.lt.s32.totalorder %s1134_s30, %s1134_s30 }
  0x2a   :  { %p1141_p4 = por %p1140_p3, %p1139_p2 }
  0x2c   :  { %p1142_p5 = pnand %p1141_p4, %p1135_p1 }
  0x2e   :  { %1145 = shalt.err (!%p1142_p5)
}
  0x2f   :  { %31 = dma.hbm_to_vmem [thread:$0]  %s1401_s0, 128, %s29_s29, [#allocation3]  }
  0x30   :  { %s1154_s16 = scalar_lea.vmem %s49_s28, 16  ;;  %s1158_s7 = scalar_lea.vmem %s49_s28, 32 }
  0x31   :  { %p1155_p6 = scmp.ne.s32.totalorder %s49_s28, %s1154_s16  ;;  %p1159_p7 = scmp.lt.s32.totalorder %s49_s28, %s49_s28 }
  0x32   :  { %p1160_p8 = scmp.lt.s32.totalorder %s1158_s7, %s1154_s16 }
  0x34   :  { %p1161_p9 = por %p1160_p8, %p1159_p7 }
  0x36   :  { %p1162_p10 = pnand %p1161_p9, %p1155_p6 }
  0x38   :  { %1165 = shalt.err (!%p1162_p10)
}
  0x39   :  { %51 = dma.hbm_to_vmem [thread:$0]  %s1403_s2, 16, %s49_s28, [#allocation5]  }
  0x3a   :  { %s1223_s19 = smov [#allocation9]   ;;  %s1224_s21 = smov [#allocation12]  }
  0x3b   :  { %s74_s20 = sshll.u32 %s1223_s19, 4  ;;  %s101_s22 = sshll.u32 %s1224_s21, 4  ;;  %s75_s20 = int_to_ptr.vmem [resolvable:$true] %s74_s20  ;;  %s102_s22 = int_to_ptr.vmem [resolvable:$true] %s101_s22 }
  0x3c   :  { %s1174_s23 = scalar_lea.vmem %s75_s20, 64  ;;  %p1179_p12 = scmp.lt.s32.totalorder %s75_s20, %s75_s20 }
  0x3d   :  { %p1175_p11 = scmp.ne.s32.totalorder %s75_s20, %s1174_s23  ;;  %p1180_p13 = scmp.lt.s32.totalorder %s1174_s23, %s1174_s23 }
  0x3f   :  { %p1181_p0 = por %p1180_p13, %p1179_p12 }
  0x41   :  { %p1182_p1 = pnand %p1181_p0, %p1175_p11 }
  0x43   :  { %1185 = shalt.err (!%p1182_p1)
}
  0x44   :  { %77 = dma.hbm_to_vmem [thread:$0]  %s1407_s6, 64, %s75_s20, [#allocation8]  }
  0x45   :  { %s1194_s24 = scalar_lea.vmem %s102_s22, 4096  ;;  %p1199_p3 = scmp.lt.s32.totalorder %s102_s22, %s102_s22 }
  0x46   :  { %p1195_p2 = scmp.ne.s32.totalorder %s102_s22, %s1194_s24  ;;  %p1200_p4 = scmp.lt.s32.totalorder %s1194_s24, %s1194_s24 }
  0x48   :  { %p1201_p5 = por %p1200_p4, %p1199_p3 }
  0x4a   :  { %p1202_p6 = pnand %p1201_p5, %p1195_p2 }
  0x4c   :  { %1205 = shalt.err (!%p1202_p6)
}
  0x4d   :  { %s1225_s2 = smov 128   ;;  %s1226_s25 = smov 8  }
  0x4e   :  { %107 = dma.hbm_to_vmem [thread:$0]  %s1412_s11, 4096, %s102_s22, [#allocation11], %s1225_s2, %s1225_s2, %s1226_s25  }
  0x4f   :  { %1206 = dma.done.wait [#allocation3], 128  }
  0x50   :  { %1207 = vsyncadd [#allocation3], 4294967168 }
  0x51   :  { %1208 = dma.done.wait [#allocation5], 32  }
  0x52   :  { %1209 = vsyncadd [#allocation5], 4294967264 }
  0x53   :  { %1210 = dma.done.wait [#allocation8], 2112  }
  0x54   :  { %1211 = vsyncadd [#allocation8], 4294965184 }
  0x55   :  { %1212 = dma.done.wait [#allocation11], 20480  }
  0x56   :  { %1213 = vsyncadd [#allocation11], 4294946816  ;;  %v1227_v0 = vmov 0.0   ;;  %v184_v1 = vld [vmem:[#allocation7 + $0x68] sm:$0xff]  ;;  %v183_v2 = vld [vmem:[#allocation7 + $0x60] sm:$0xff]  ;;  %vm134_vm0 = vcmask 261120   ;;  %v158_v30 = vlaneseq }
  0x57   :  { %276 = vmatprep.mubr.f32.mxu1 %v1227_v0  ;;  %v180_v3 = vld [vmem:[#allocation7 + $0x48] sm:$0xff]  ;;  %236 = vmatprep.subr.mxu1 %v184_v1  ;;  %v179_v4 = vld [vmem:[#allocation7 + $0x40] sm:$0xff]  ;;  %v131_v7 = vld [vmem:[#allocation2] sm:$0xff] }
  0x58   :  { %237 = vmatpush1.msra.mxu1 %v183_v2  ;;  %v176_v5 = vld [vmem:[#allocation7 + $0x28] sm:$0xff]  ;;  %v175_v6 = vld [vmem:[#allocation7 + $0x20] sm:$0xff]  ;;  %v135_v9 = vsel %vm134_vm0, %v131_v7, 0.0  ;;  %v186_v12 = vld [vmem:[#allocation7 + $0x78] sm:$0xff]  ;;  %v1322_v31 = vshrl.u32 %v158_v30, 7 }
  0x59   :  { %238 = vmatprep.subr.mxu1 %v180_v3  ;;  %v172_v8 = vld [vmem:[#allocation7 + $0x8] sm:$0xff]  ;;  %v171_v10 = vld [vmem:[#allocation7] sm:$0xff]  ;;  %v136_v11 = vrot.slane %v135_v9, 4  ;;  %v132_v32 = vld [vmem:[#allocation4] sm:$0x1] }
  0x5a   :  { %239 = vmatpush1.msra.mxu1 %v179_v4  ;;  %v1325_v33 = vsub.s32 0, %v1322_v31  ;;  %v998_v37 = vld [vmem:[#allocation6] ss:$0 sm:$0xff]  ;;  %v185_v40 = vld [vmem:[#allocation7 + $0x70] sm:$0xff]  ;;  %v540_v53 = vld [vmem:[#allocation10 + $0xe0] sm:$0xff] }
  0x5b   :  { %240 = vmatprep.subr.mxu1 %v176_v5  ;;  %v137_v13 = vadd.f32 %v136_v11, %v135_v9  ;;  %v182_v41 = vld [vmem:[#allocation7 + $0x58] sm:$0xff]  ;;  %v181_v42 = vld [vmem:[#allocation7 + $0x50] sm:$0xff]  ;;  %v604_v54 = vld [vmem:[#allocation10 + $0x2e0] sm:$0xff] }
  0x5c   :  { %241 = vmatpush1.msra.mxu1 %v175_v6  ;;  %v178_v43 = vld [vmem:[#allocation7 + $0x38] sm:$0xff]  ;;  %v177_v44 = vld [vmem:[#allocation7 + $0x30] sm:$0xff]  ;;  %v536_v61 = vld [vmem:[#allocation10 + $0xc0] sm:$0xff] }
  0x5d   :  { %242 = vmatprep.subr.mxu1 %v172_v8  ;;  %v138_v14 = vrot.slane %v137_v13, 2  ;;  %v174_v45 = vld [vmem:[#allocation7 + $0x18] sm:$0xff]  ;;  %v173_v46 = vld [vmem:[#allocation7 + $0x10] sm:$0xff]  ;;  %v600_v62 = vld [vmem:[#allocation10 + $0x2c0] sm:$0xff] }
  0x5e   :  { %243 = vmatpush1.msra.mxu1 %v171_v10  ;;  %v543_v47 = vld [vmem:[#allocation10 + $0xf8] sm:$0xff]  ;;  %v542_v49 = vld [vmem:[#allocation10 + $0xf0] sm:$0xff]  ;;  %v541_v51 = vld [vmem:[#allocation10 + $0xe8] sm:$0xff] }
  0x5f   :  { %307 = vmatprep.subr.mxu1 %v186_v12  ;;  %v139_v15 = vadd.f32 %v138_v14, %v137_v13  ;;  %v607_v48 = vld [vmem:[#allocation10 + $0x2f8] sm:$0xff]  ;;  %652 = vmatprep.subr.mxu0 %v543_v47  ;;  %v606_v50 = vld [vmem:[#allocation10 + $0x2f0] sm:$0xff]  ;;  %v605_v52 = vld [vmem:[#allocation10 + $0x2e8] sm:$0xff] }
  0x60   :  { %653 = vmatpush1.msra.mxu0 %v542_v49  ;;  %v539_v55 = vld [vmem:[#allocation10 + $0xd8] sm:$0xff]  ;;  %v538_v57 = vld [vmem:[#allocation10 + $0xd0] sm:$0xff]  ;;  %v537_v59 = vld [vmem:[#allocation10 + $0xc8] sm:$0xff] }
  0x61   :  { %v140_v16 = vrot.slane %v139_v15, 1  ;;  %654 = vmatprep.subr.mxu0 %v541_v51  ;;  %v603_v56 = vld [vmem:[#allocation10 + $0x2d8] sm:$0xff]  ;;  %v602_v58 = vld [vmem:[#allocation10 + $0x2d0] sm:$0xff]  ;;  %v601_v60 = vld [vmem:[#allocation10 + $0x2c8] sm:$0xff] }
  0x62   :  { %655 = vmatpush1.msra.mxu0 %v540_v53  ;;  %v535_v63 = vld [vmem:[#allocation10 + $0xb8] sm:$0xff]  ;;  %v534_v1 = vld [vmem:[#allocation10 + $0xb0] sm:$0xff]  ;;  %v533_v3 = vld [vmem:[#allocation10 + $0xa8] sm:$0xff] }
  0x63   :  { %v141_v17 = vadd.f32 %v140_v16, %v139_v15  ;;  %656 = vmatprep.subr.mxu0 %v539_v55  ;;  %v598_v2 = vld [vmem:[#allocation10 + $0x2b0] sm:$0xff]  ;;  %v597_v4 = vld [vmem:[#allocation10 + $0x2a8] sm:$0xff]  ;;  %v532_v5 = vld [vmem:[#allocation10 + $0xa0] sm:$0xff] }
  0x64   :  { %657 = vmatpush1.msra.mxu0 %v538_v57  ;;  %v596_v6 = vld [vmem:[#allocation10 + $0x2a0] sm:$0xff]  ;;  %v595_v8 = vld [vmem:[#allocation10 + $0x298] sm:$0xff]  ;;  %v530_v9 = vld [vmem:[#allocation10 + $0x90] sm:$0xff] }
  0x65   :  { %v143_v18 = vmul.f32 0.125, %v141_v17  ;;  %658 = vmatprep.subr.mxu0 %v537_v59  ;;  %v594_v10 = vld [vmem:[#allocation10 + $0x290] sm:$0xff]  ;;  %v529_v11 = vld [vmem:[#allocation10 + $0x88] sm:$0xff]  ;;  %v528_v13 = vld [vmem:[#allocation10 + $0x80] sm:$0xff] }
  0x66   :  { %659 = vmatpush1.msra.mxu0 %v536_v61  ;;  %v593_v12 = vld [vmem:[#allocation10 + $0x288] sm:$0xff]  ;;  %v592_v14 = vld [vmem:[#allocation10 + $0x280] sm:$0xff]  ;;  %v527_v15 = vld [vmem:[#allocation10 + $0x78] sm:$0xff] }
  0x67   :  { %v144_v19 = vsub.f32 %v131_v7, %v143_v18  ;;  %660 = vmatprep.subr.mxu0 %v535_v63  ;;  %v531_v7 = vld [vmem:[#allocation10 + $0x98] sm:$0xff]  ;;  %v526_v17 = vld [vmem:[#allocation10 + $0x70] sm:$0xff]  ;;  %v584_v30 = vld [vmem:[#allocation10 + $0x240] sm:$0xff] }
  0x68   :  { %661 = vmatpush1.msra.mxu0 %v534_v1  ;;  %v591_v16 = vld [vmem:[#allocation10 + $0x278] sm:$0xff]  ;;  %v590_v18 = vld [vmem:[#allocation10 + $0x270] sm:$0xff]  ;;  %v512_v47 = vld [vmem:[#allocation10] sm:$0xff] }
  0x69   :  { %v145_v20 = vmul.f32 %v144_v19, %v144_v19  ;;  %662 = vmatprep.subr.mxu0 %v533_v3  ;;  %v575_v49 = vld [vmem:[#allocation10 + $0x1f8] sm:$0xff]  ;;  %v574_v51 = vld [vmem:[#allocation10 + $0x1f0] sm:$0xff]  ;;  %v573_v53 = vld [vmem:[#allocation10 + $0x1e8] sm:$0xff] }
  0x6a   :  { %663 = vmatpush1.msra.mxu0 %v532_v5  ;;  %v572_v55 = vld [vmem:[#allocation10 + $0x1e0] sm:$0xff]  ;;  %v571_v57 = vld [vmem:[#allocation10 + $0x1d8] sm:$0xff]  ;;  %v570_v59 = vld [vmem:[#allocation10 + $0x1d0] sm:$0xff] }
  0x6b   :  { %v146_v21 = vsel %vm134_vm0, %v145_v20, 0.0  ;;  %664 = vmatprep.subr.mxu0 %v531_v7  ;;  %v589_v20 = vld [vmem:[#allocation10 + $0x268] sm:$0xff]  ;;  %v568_v63 = vld [vmem:[#allocation10 + $0x1c0] sm:$0xff]  ;;  %v567_v1 = vld [vmem:[#allocation10 + $0x1b8] sm:$0xff] }
  0x6c   :  { %v147_v22 = vrot.slane %v146_v21, 4  ;;  %665 = vmatpush1.msra.mxu0 %v530_v9  ;;  %v569_v61 = vld [vmem:[#allocation10 + $0x1c8] sm:$0xff]  ;;  %v566_v3 = vld [vmem:[#allocation10 + $0x1b0] sm:$0xff]  ;;  %v564_v7 = vld [vmem:[#allocation10 + $0x1a0] sm:$0xff] }
  0x6d   :  { %666 = vmatprep.subr.mxu0 %v529_v11  ;;  %v565_v5 = vld [vmem:[#allocation10 + $0x1a8] sm:$0xff]  ;;  %v563_v9 = vld [vmem:[#allocation10 + $0x198] sm:$0xff]  ;;  %v562_v11 = vld [vmem:[#allocation10 + $0x190] sm:$0xff] }
  0x6e   :  { %v148_v23 = vadd.f32 %v147_v22, %v146_v21  ;;  %667 = vmatpush1.msra.mxu0 %v528_v13  ;;  %v524_v21 = vld [vmem:[#allocation10 + $0x60] sm:$0xff]  ;;  %v561_v13 = vld [vmem:[#allocation10 + $0x188] sm:$0xff] }
  0x6f   :  { %668 = vmatprep.subr.mxu0 %v527_v15  ;;  %v588_v22 = vld [vmem:[#allocation10 + $0x260] sm:$0xff] }
  0x70   :  { %v149_v24 = vrot.slane %v148_v23, 2  ;;  %669 = vmatpush1.msra.mxu0 %v526_v17  ;;  %v560_v15 = vld [vmem:[#allocation10 + $0x180] sm:$0xff]  ;;  %v559_v17 = vld [vmem:[#allocation10 + $0x178] sm:$0xff] }
  0x72   :  { %v150_v25 = vadd.f32 %v149_v24, %v148_v23  ;;  %v523_v23 = vld [vmem:[#allocation10 + $0x58] sm:$0xff] }
  0x73   :  { %v587_v24 = vld [vmem:[#allocation10 + $0x258] sm:$0xff] }
  0x74   :  { %v151_v26 = vrot.slane %v150_v25, 1 }
  0x76   :  { %v152_v27 = vadd.f32 %v151_v26, %v150_v25  ;;  %v522_v25 = vld [vmem:[#allocation10 + $0x50] sm:$0xff] }
  0x77   :  { %v586_v26 = vld [vmem:[#allocation10 + $0x250] sm:$0xff] }
  0x78   :  { %v153_v28 = vmul.f32 0.125, %v152_v27  ;;  %v521_v27 = vld [vmem:[#allocation10 + $0x48] sm:$0xff] }
  0x7a   :  { %v154_v29 = vadd.f32 1e-05, %v153_v28  ;;  %v585_v28 = vld [vmem:[#allocation10 + $0x248] sm:$0xff] }
  0x7c   :  { %1052 = vrsqrt.f32 %v154_v29  ;;  %v520_v29 = vld [vmem:[#allocation10 + $0x40] sm:$0xff] }
  0x89   :  { %v1053_v34 = vpop.eup %1052 }
  0x8a   :  { %v156_v35 = vmul.f32 %v1053_v34, %v132_v32  ;;  %v519_v32 = vld [vmem:[#allocation10 + $0x38] sm:$0xff] }
  0x8b   :  { %v583_v34 = vld [vmem:[#allocation10 + $0x238] sm:$0xff] }
  0x8c   :  { %v161_v36 = vrot.slane %v156_v35, %v1325_v33  ;;  %v518_v35 = vld [vmem:[#allocation10 + $0x30] sm:$0xff] }
  0x8e   :  { %v163_v38 = vmul.f32 %v161_v36, %v144_v19  ;;  %v525_v19 = vld [vmem:[#allocation10 + $0x68] sm:$0xff]  ;;  %v582_v36 = vld [vmem:[#allocation10 + $0x230] sm:$0xff] }
  0x8f   :  { %670 = vmatprep.subr.mxu0 %v525_v19  ;;  %v558_v19 = vld [vmem:[#allocation10 + $0x170] sm:$0xff] }
  0x90   :  { %v170_v39 = vadd.f32 %v998_v37, %v163_v38  ;;  %671 = vmatpush1.msra.mxu0 %v524_v21  ;;  %v517_v37 = vld [vmem:[#allocation10 + $0x28] sm:$0xff] }
  0x91   :  { %672 = vmatprep.subr.mxu0 %v523_v23  ;;  %v581_v38 = vld [vmem:[#allocation10 + $0x228] sm:$0xff]  ;;  %v556_v23 = vld [vmem:[#allocation10 + $0x160] sm:$0xff] }
  0x92   :  { %999 = vmatmul.mubr.msk.f32.vlgmr.msra.gmra.mxu1 %vm134_vm0, %v170_v39  ;;  %673 = vmatpush1.msra.mxu0 %v522_v25  ;;  %v557_v21 = vld [vmem:[#allocation10 + $0x168] sm:$0xff]  ;;  %v555_v25 = vld [vmem:[#allocation10 + $0x158] sm:$0xff] }
  0x93   :  { %308 = vmatpush1.msra.mxu1 %v185_v40  ;;  %347 = vmatprep.mubr.f32.mxu1 %v1227_v0  ;;  %v599_v0 = vld [vmem:[#allocation10 + $0x2b8] sm:$0xff]  ;;  %v580_v40 = vld [vmem:[#allocation10 + $0x220] sm:$0xff] }
  0x94   :  { %309 = vmatprep.subr.mxu1 %v182_v41  ;;  %674 = vmatprep.subr.mxu0 %v521_v27  ;;  %v515_v41 = vld [vmem:[#allocation10 + $0x18] sm:$0xff]  ;;  %v554_v27 = vld [vmem:[#allocation10 + $0x150] sm:$0xff] }
  0x95   :  { %310 = vmatpush1.msra.mxu1 %v181_v42  ;;  %675 = vmatpush1.msra.mxu0 %v520_v29  ;;  %v579_v42 = vld [vmem:[#allocation10 + $0x218] sm:$0xff]  ;;  %v553_v29 = vld [vmem:[#allocation10 + $0x148] sm:$0xff] }
  0x96   :  { %311 = vmatprep.subr.mxu1 %v178_v43  ;;  %676 = vmatprep.subr.mxu0 %v519_v32  ;;  %v514_v43 = vld [vmem:[#allocation10 + $0x10] sm:$0xff]  ;;  %v552_v32 = vld [vmem:[#allocation10 + $0x140] sm:$0xff] }
  0x97   :  { %312 = vmatpush1.msra.mxu1 %v177_v44  ;;  %677 = vmatpush1.msra.mxu0 %v518_v35  ;;  %v578_v44 = vld [vmem:[#allocation10 + $0x210] sm:$0xff]  ;;  %v551_v35 = vld [vmem:[#allocation10 + $0x138] sm:$0xff] }
  0x98   :  { %313 = vmatprep.subr.mxu1 %v174_v45  ;;  %678 = vmatprep.subr.mxu0 %v517_v37  ;;  %v513_v45 = vld [vmem:[#allocation10 + $0x8] sm:$0xff]  ;;  %v550_v37 = vld [vmem:[#allocation10 + $0x130] sm:$0xff] }
  0x99   :  { %314 = vmatpush1.msra.mxu1 %v173_v46  ;;  %v577_v46 = vld [vmem:[#allocation10 + $0x208] sm:$0xff] }
  0x9a   :  { %1000 = vmatmul.mubr.msk.f32.vlgmr.msra.gmra.mxu1 %vm134_vm0, %v170_v39  ;;  %723 = vmatprep.subr.mxu1 %v607_v48  ;;  %v516_v39 = vld [vmem:[#allocation10 + $0x20] sm:$0xff] }
  0x9b   :  { %724 = vmatpush1.msra.mxu1 %v606_v50  ;;  %679 = vmatpush1.msra.mxu0 %v516_v39  ;;  %v576_v48 = vld [vmem:[#allocation10 + $0x200] sm:$0xff]  ;;  %v639_v50 = vld [vmem:[#allocation10 + $0x3f8] sm:$0xff]  ;;  %v549_v39 = vld [vmem:[#allocation10 + $0x128] sm:$0xff] }
  0x9c   :  { %725 = vmatprep.subr.mxu1 %v605_v52  ;;  %680 = vmatprep.subr.mxu0 %v515_v41  ;;  %v638_v52 = vld [vmem:[#allocation10 + $0x3f0] sm:$0xff]  ;;  %v548_v41 = vld [vmem:[#allocation10 + $0x120] sm:$0xff] }
  0x9d   :  { %726 = vmatpush1.msra.mxu1 %v604_v54  ;;  %681 = vmatpush1.msra.mxu0 %v514_v43  ;;  %v637_v54 = vld [vmem:[#allocation10 + $0x3e8] sm:$0xff]  ;;  %v547_v43 = vld [vmem:[#allocation10 + $0x118] sm:$0xff] }
  0x9e   :  { %727 = vmatprep.subr.mxu1 %v603_v56  ;;  %682 = vmatprep.subr.mxu0 %v513_v45  ;;  %v636_v56 = vld [vmem:[#allocation10 + $0x3e0] sm:$0xff]  ;;  %v546_v45 = vld [vmem:[#allocation10 + $0x110] sm:$0xff] }
  0x9f   :  { %728 = vmatpush1.msra.mxu1 %v602_v58  ;;  %683 = vmatpush1.msra.mxu0 %v512_v47  ;;  %v635_v58 = vld [vmem:[#allocation10 + $0x3d8] sm:$0xff]  ;;  %v545_v47 = vld [vmem:[#allocation10 + $0x108] sm:$0xff] }
  0xa0   :  { %729 = vmatprep.subr.mxu1 %v601_v60  ;;  %684 = vmatprep.subr.mxu0 %v575_v49  ;;  %v634_v60 = vld [vmem:[#allocation10 + $0x3d0] sm:$0xff]  ;;  %v544_v49 = vld [vmem:[#allocation10 + $0x100] sm:$0xff] }
  0xa1   :  { %730 = vmatpush1.msra.mxu1 %v600_v62  ;;  %685 = vmatpush2.msra.mxu0 %v574_v51  ;;  %v633_v62 = vld [vmem:[#allocation10 + $0x3c8] sm:$0xff]  ;;  %v187_v51 = vld [vmem:[%s1405_s4] sm:$0xf] }
  0xa2   :  { %731 = vmatprep.subr.mxu1 %v599_v0  ;;  %686 = vmatprep.subr.mxu0 %v573_v53  ;;  %v632_v0 = vld [vmem:[#allocation10 + $0x3c0] sm:$0xff]  ;;  %v192_v53 = vrot.slane %v187_v51, %v1325_v33 }
  0xa3   :  { %732 = vmatpush1.msra.mxu1 %v598_v2  ;;  %687 = vmatpush2.msra.mxu0 %v572_v55  ;;  %v631_v2 = vld [vmem:[#allocation10 + $0x3b8] sm:$0xff] }
  0xa4   :  { %733 = vmatprep.subr.mxu1 %v597_v4  ;;  %688 = vmatprep.subr.mxu0 %v571_v57  ;;  %v630_v4 = vld [vmem:[#allocation10 + $0x3b0] sm:$0xff]  ;;  %v1339_v57 = vsub.s32 2, %v1322_v31 }
  0xa5   :  { %734 = vmatpush1.msra.mxu1 %v596_v6  ;;  %689 = vmatpush2.msra.mxu0 %v570_v59  ;;  %v629_v6 = vld [vmem:[#allocation10 + $0x3a8] sm:$0xff] }
  0xa6   :  { %735 = vmatprep.subr.mxu1 %v595_v8  ;;  %690 = vmatprep.subr.mxu0 %v569_v61  ;;  %v628_v8 = vld [vmem:[#allocation10 + $0x3a0] sm:$0xff]  ;;  %v1342_v61 = vsub.s32 3, %v1322_v31 }
  0xa7   :  { %736 = vmatpush1.msra.mxu1 %v594_v10  ;;  %691 = vmatpush2.msra.mxu0 %v568_v63  ;;  %v627_v10 = vld [vmem:[#allocation10 + $0x398] sm:$0xff] }
  0xa8   :  { %737 = vmatprep.subr.mxu1 %v593_v12  ;;  %692 = vmatprep.subr.mxu0 %v567_v1  ;;  %v626_v12 = vld [vmem:[#allocation10 + $0x390] sm:$0xff] }
  0xa9   :  { %738 = vmatpush1.msra.mxu1 %v592_v14  ;;  %693 = vmatpush2.msra.mxu0 %v566_v3  ;;  %v625_v14 = vld [vmem:[#allocation10 + $0x388] sm:$0xff]  ;;  %v204_v3 = vrot.slane %v187_v51, %v1342_v61 }
  0xaa   :  { %739 = vmatprep.subr.mxu1 %v591_v16  ;;  %694 = vmatprep.subr.mxu0 %v565_v5  ;;  %v624_v16 = vld [vmem:[#allocation10 + $0x380] sm:$0xff] }
  0xab   :  { %740 = vmatpush1.msra.mxu1 %v590_v18  ;;  %695 = vmatpush2.msra.mxu0 %v564_v7  ;;  %v623_v18 = vld [vmem:[#allocation10 + $0x378] sm:$0xff] }
  0xac   :  { %741 = vmatprep.subr.mxu1 %v589_v20  ;;  %696 = vmatprep.subr.mxu0 %v563_v9  ;;  %v622_v20 = vld [vmem:[#allocation10 + $0x370] sm:$0xff] }
  0xad   :  { %742 = vmatpush1.msra.mxu1 %v588_v22  ;;  %697 = vmatpush2.msra.mxu0 %v562_v11  ;;  %v621_v22 = vld [vmem:[#allocation10 + $0x368] sm:$0xff] }
  0xae   :  { %743 = vmatprep.subr.mxu1 %v587_v24  ;;  %698 = vmatprep.subr.mxu0 %v561_v13  ;;  %v620_v24 = vld [vmem:[#allocation10 + $0x360] sm:$0xff] }
  0xaf   :  { %744 = vmatpush1.msra.mxu1 %v586_v26  ;;  %699 = vmatpush2.msra.mxu0 %v560_v15  ;;  %v619_v26 = vld [vmem:[#allocation10 + $0x358] sm:$0xff] }
  0xb0   :  { %745 = vmatprep.subr.mxu1 %v585_v28  ;;  %700 = vmatprep.subr.mxu0 %v559_v17  ;;  %v618_v28 = vld [vmem:[#allocation10 + $0x350] sm:$0xff] }
  0xb1   :  { %746 = vmatpush1.msra.mxu1 %v584_v30  ;;  %701 = vmatpush2.msra.mxu0 %v558_v19  ;;  %v617_v30 = vld [vmem:[#allocation10 + $0x348] sm:$0xff] }
  0xb2   :  { %747 = vmatprep.subr.mxu1 %v583_v34  ;;  %702 = vmatprep.subr.mxu0 %v557_v21  ;;  %v616_v34 = vld [vmem:[#allocation10 + $0x340] sm:$0xff] }
  0xb3   :  { %748 = vmatpush1.msra.mxu1 %v582_v36  ;;  %703 = vmatpush2.msra.mxu0 %v556_v23  ;;  %v615_v36 = vld [vmem:[#allocation10 + $0x338] sm:$0xff] }
  0xb4   :  { %749 = vmatprep.subr.mxu1 %v581_v38  ;;  %704 = vmatprep.subr.mxu0 %v555_v25  ;;  %v614_v38 = vld [vmem:[#allocation10 + $0x330] sm:$0xff] }
  0xb5   :  { %750 = vmatpush1.msra.mxu1 %v580_v40  ;;  %705 = vmatpush2.msra.mxu0 %v554_v27  ;;  %v613_v40 = vld [vmem:[#allocation10 + $0x328] sm:$0xff] }
  0xb6   :  { %751 = vmatprep.subr.mxu1 %v579_v42  ;;  %706 = vmatprep.subr.mxu0 %v553_v29  ;;  %v612_v42 = vld [vmem:[#allocation10 + $0x320] sm:$0xff] }
  0xb7   :  { %752 = vmatpush1.msra.mxu1 %v578_v44  ;;  %707 = vmatpush2.msra.mxu0 %v552_v32  ;;  %v611_v44 = vld [vmem:[#allocation10 + $0x318] sm:$0xff] }
  0xb8   :  { %753 = vmatprep.subr.mxu1 %v577_v46  ;;  %708 = vmatprep.subr.mxu0 %v551_v35  ;;  %v610_v46 = vld [vmem:[#allocation10 + $0x310] sm:$0xff] }
  0xb9   :  { %754 = vmatpush1.msra.mxu1 %v576_v48  ;;  %709 = vmatpush2.msra.mxu0 %v550_v37  ;;  %v609_v48 = vld [vmem:[#allocation10 + $0x308] sm:$0xff] }
  0xba   :  { %755 = vmatprep.subr.mxu1 %v639_v50  ;;  %710 = vmatprep.subr.mxu0 %v549_v39  ;;  %v608_v50 = vld [vmem:[#allocation10 + $0x300] sm:$0xff] }
  0xbb   :  { %756 = vmatpush2.msra.mxu1 %v638_v52  ;;  %711 = vmatpush2.msra.mxu0 %v548_v41  ;;  %v1334_v52 = vsub.s32 1, %v1322_v31 }
  0xbc   :  { %757 = vmatprep.subr.mxu1 %v637_v54  ;;  %712 = vmatprep.subr.mxu0 %v547_v43 }
  0xbd   :  { %758 = vmatpush2.msra.mxu1 %v636_v56  ;;  %713 = vmatpush2.msra.mxu0 %v546_v45  ;;  %v196_v54 = vrot.slane %v187_v51, %v1334_v52 }
  0xbe   :  { %759 = vmatprep.subr.mxu1 %v635_v58  ;;  %714 = vmatprep.subr.mxu0 %v545_v47 }
  0xbf   :  { %760 = vmatpush2.msra.mxu1 %v634_v60  ;;  %715 = vmatpush2.msra.mxu0 %v544_v49 }
  0xc0   :  { %761 = vmatprep.subr.mxu1 %v633_v62 }
  0xc1   :  { %762 = vmatpush2.msra.mxu1 %v632_v0  ;;  %v200_v0 = vrot.slane %v187_v51, %v1339_v57 }
  0xc2   :  { %763 = vmatprep.subr.mxu1 %v631_v2 }
  0xc3   :  { %764 = vmatpush2.msra.mxu1 %v630_v4 }
  0xc4   :  { %765 = vmatprep.subr.mxu1 %v629_v6 }
  0xc5   :  { %766 = vmatpush2.msra.mxu1 %v628_v8 }
  0xc6   :  { %767 = vmatprep.subr.mxu1 %v627_v10 }
  0xc7   :  { %768 = vmatpush2.msra.mxu1 %v626_v12 }
  0xc8   :  { %769 = vmatprep.subr.mxu1 %v625_v14 }
  0xc9   :  { %770 = vmatpush2.msra.mxu1 %v624_v16 }
  0xca   :  { %771 = vmatprep.subr.mxu1 %v623_v18 }
  0xcb   :  { %772 = vmatpush2.msra.mxu1 %v622_v20 }
  0xcc   :  { %773 = vmatprep.subr.mxu1 %v621_v22 }
  0xcd   :  { %774 = vmatpush2.msra.mxu1 %v620_v24 }
  0xce   :  { %775 = vmatprep.subr.mxu1 %v619_v26 }
  0xcf   :  { %776 = vmatpush2.msra.mxu1 %v618_v28 }
  0xd0   :  { %777 = vmatprep.subr.mxu1 %v617_v30 }
  0xd1   :  { %778 = vmatpush2.msra.mxu1 %v616_v34 }
  0xd2   :  { %779 = vmatprep.subr.mxu1 %v615_v36 }
  0xd3   :  { %780 = vmatpush2.msra.mxu1 %v614_v38 }
  0xd4   :  { %781 = vmatprep.subr.mxu1 %v613_v40 }
  0xd5   :  { %782 = vmatpush2.msra.mxu1 %v612_v42 }
  0xd6   :  { %783 = vmatprep.subr.mxu1 %v611_v44 }
  0xd7   :  { %784 = vmatpush2.msra.mxu1 %v610_v46 }
  0xd8   :  { %785 = vmatprep.subr.mxu1 %v609_v48 }
  0xd9   :  { %786 = vmatpush2.msra.mxu1 %v608_v50 }
 0x152   :  { %v278_v55 = vpop.f32.mrf.mxu1 }
 0x153   :  { %v279_v56 = vadd.f32 %v278_v55, %v192_v53 }
 0x154   :  { %v280_v58 = vpop.f32.mrf.mxu1 }
 0x155   :  { %v354_v59 = vmax.f32 %v279_v56, 0.0  ;;  %v281_v60 = vadd.f32 %v280_v58, %v196_v54 }
 0x157   :  { %v360_v62 = vrot.slane %v354_v59, 4  ;;  %v355_v63 = vmax.f32 %v281_v60, 0.0 }
 0x159   :  { %v361_v1 = vadd.f32 %v360_v62, %v354_v59  ;;  %v366_v2 = vrot.slane %v355_v63, 4 }
 0x15a   :  { %v349_v4 = vpop.f32.mrf.mxu1 }
 0x15b   :  { %v362_v5 = vrot.slane %v361_v1, 2  ;;  %v367_v6 = vadd.f32 %v366_v2, %v355_v63  ;;  %v350_v7 = vadd.f32 %v349_v4, %v200_v0 }
 0x15c   :  { %v351_v8 = vpop.f32.mrf.mxu1 }
 0x15d   :  { %v363_v9 = vadd.f32 %v362_v5, %v361_v1  ;;  %v368_v10 = vrot.slane %v367_v6, 2  ;;  %v356_v11 = vmax.f32 %v350_v7, 0.0  ;;  %v352_v12 = vadd.f32 %v351_v8, %v204_v3 }
 0x15f   :  { %v364_v13 = vrot.slane %v363_v9, 1  ;;  %v369_v14 = vadd.f32 %v368_v10, %v367_v6  ;;  %v372_v15 = vrot.slane %v356_v11, 4  ;;  %v357_v16 = vmax.f32 %v352_v12, 0.0 }
 0x161   :  { %v365_v17 = vadd.f32 %v364_v13, %v363_v9  ;;  %v373_v18 = vadd.f32 %v372_v15, %v356_v11  ;;  %v378_v19 = vrot.slane %v357_v16, 4  ;;  %v370_v20 = vrot.slane %v369_v14, 1 }
 0x163   :  { %v384_v21 = vmul.f32 0.125, %v365_v17  ;;  %v374_v22 = vrot.slane %v373_v18, 2  ;;  %v379_v23 = vadd.f32 %v378_v19, %v357_v16  ;;  %v371_v24 = vadd.f32 %v370_v20, %v369_v14 }
 0x165   :  { %v1346_v25 = vsub.f32 %v354_v59, %v384_v21  ;;  %v375_v26 = vadd.f32 %v374_v22, %v373_v18  ;;  %v380_v27 = vrot.slane %v379_v23, 2  ;;  %v385_v28 = vmul.f32 0.125, %v371_v24 }
 0x167   :  { %v392_v29 = vmul.f32 %v1346_v25, %v1346_v25  ;;  %v376_v30 = vrot.slane %v375_v26, 1  ;;  %v381_v32 = vadd.f32 %v380_v27, %v379_v23  ;;  %v1350_v34 = vsub.f32 %v355_v63, %v385_v28 }
 0x169   :  { %v396_v35 = vrot.slane %v392_v29, 4  ;;  %v377_v36 = vadd.f32 %v376_v30, %v375_v26  ;;  %v382_v37 = vrot.slane %v381_v32, 1  ;;  %v393_v38 = vmul.f32 %v1350_v34, %v1350_v34  ;;  %v358_v30 = vld [vmem:[%s1406_s5] sm:$0xf] }
 0x16b   :  { %v397_v39 = vadd.f32 %v396_v35, %v392_v29  ;;  %v386_v40 = vmul.f32 0.125, %v377_v36  ;;  %v383_v41 = vadd.f32 %v382_v37, %v381_v32  ;;  %v402_v42 = vrot.slane %v393_v38, 4  ;;  %v359_v32 = vld [vmem:[#allocation9] sm:$0xf] }
 0x16c   :  { %v495_v37 = vrot.slane %v359_v32, %v1334_v52 }
 0x16d   :  { %v398_v43 = vrot.slane %v397_v39, 2  ;;  %v1354_v44 = vsub.f32 %v356_v11, %v386_v40  ;;  %v387_v45 = vmul.f32 0.125, %v383_v41  ;;  %v403_v46 = vadd.f32 %v402_v42, %v393_v38 }
 0x16e   :  { %v491_v38 = vrot.slane %v359_v32, %v1325_v33 }
 0x16f   :  { %v399_v47 = vadd.f32 %v398_v43, %v397_v39  ;;  %v394_v48 = vmul.f32 %v1354_v44, %v1354_v44  ;;  %v391_v49 = vsub.f32 %v357_v16, %v387_v45  ;;  %v404_v50 = vrot.slane %v403_v46, 2 }
 0x170   :  { %v1228_v16 = vmov 1966171168   ;;  %v499_v39 = vrot.slane %v359_v32, %v1339_v57 }
 0x171   :  { %v400_v51 = vrot.slane %v399_v47, 1  ;;  %v408_v53 = vrot.slane %v394_v48, 4  ;;  %v395_v54 = vmul.f32 %v391_v49, %v391_v49  ;;  %v405_v55 = vadd.f32 %v404_v50, %v403_v46 }
 0x172   :  { %v439_v17 = vunpack.c.l.s4 %v1228_v16  ;;  %v880_v16 = vld [vmem:[#allocation12 + $0x8] sm:$0xff] }
 0x173   :  { %v409_v56 = vadd.f32 %v408_v53, %v394_v48  ;;  %v414_v58 = vrot.slane %v395_v54, 4  ;;  %v406_v59 = vrot.slane %v405_v55, 1  ;;  %v401_v60 = vadd.f32 %v400_v51, %v399_v47 }
 0x174   :  { %v440_v18 = vunpack.c.0.s8 %v439_v17  ;;  %v895_v17 = vld [vmem:[#allocation12 + $0x80] sm:$0xff] }
 0x175   :  { %v410_v62 = vrot.slane %v409_v56, 2  ;;  %v415_v63 = vadd.f32 %v414_v58, %v395_v54  ;;  %v407_v0 = vadd.f32 %v406_v59, %v405_v55  ;;  %v420_v4 = vmul.f32 0.125, %v401_v60  ;;  %v894_v55 = vld [vmem:[#allocation12 + $0x78] sm:$0xff]  ;;  %v905_v60 = vld [vmem:[#allocation12 + $0xd0] sm:$0xff] }
 0x176   :  { %v1359_v23 = vsub.s32 %v440_v18, %v1322_v31  ;;  %v503_v31 = vrot.slane %v359_v32, %v1342_v61  ;;  %v906_v58 = vld [vmem:[#allocation12 + $0xd8] sm:$0xff]  ;;  %v879_v18 = vld [vmem:[#allocation12] sm:$0xff] }
 0x177   :  { %v411_v1 = vadd.f32 %v410_v62, %v409_v56  ;;  %v416_v2 = vrot.slane %v415_v63, 2  ;;  %v421_v3 = vmul.f32 0.125, %v407_v0  ;;  %v424_v10 = vadd.f32 1e-05, %v420_v4  ;;  %v907_v56 = vld [vmem:[#allocation12 + $0xe0] sm:$0xff]  ;;  %v890_v59 = vld [vmem:[#allocation12 + $0x58] sm:$0xff] }
 0x178   :  { %v889_v62 = vld [vmem:[#allocation12 + $0x50] sm:$0xff]  ;;  %v888_v0 = vld [vmem:[#allocation12 + $0x48] sm:$0xff]  ;;  %v886_v4 = vld [vmem:[#allocation12 + $0x38] sm:$0xff] }
 0x179   :  { %v412_v5 = vrot.slane %v411_v1, 1  ;;  %v417_v6 = vadd.f32 %v416_v2, %v415_v63  ;;  %v425_v9 = vadd.f32 1e-05, %v421_v3  ;;  %v904_v63 = vld [vmem:[#allocation12 + $0xc8] sm:$0xff]  ;;  %v887_v2 = vld [vmem:[#allocation12 + $0x40] sm:$0xff]  ;;  %v902_v3 = vld [vmem:[#allocation12 + $0xb8] sm:$0xff] }
 0x17b   :  { %v413_v7 = vadd.f32 %v412_v5, %v411_v1  ;;  %v418_v8 = vrot.slane %v417_v6, 1  ;;  %1054 = vrsqrt.f32 %v425_v9  ;;  %v903_v1 = vld [vmem:[#allocation12 + $0xc0] sm:$0xff]  ;;  %v901_v5 = vld [vmem:[#allocation12 + $0xb0] sm:$0xff] }
 0x17c   :  { %1056 = vrsqrt.f32 %v424_v10  ;;  %v899_v9 = vld [vmem:[#allocation12 + $0xa0] sm:$0xff] }
 0x17d   :  { %v422_v11 = vmul.f32 0.125, %v413_v7  ;;  %v419_v12 = vadd.f32 %v418_v8, %v417_v6  ;;  %v885_v6 = vld [vmem:[#allocation12 + $0x30] sm:$0xff]  ;;  %v900_v7 = vld [vmem:[#allocation12 + $0xa8] sm:$0xff]  ;;  %v883_v10 = vld [vmem:[#allocation12 + $0x20] sm:$0xff] }
 0x17e   :  { %v884_v8 = vld [vmem:[#allocation12 + $0x28] sm:$0xff] }
 0x17f   :  { %v426_v13 = vadd.f32 1e-05, %v422_v11  ;;  %v423_v14 = vmul.f32 0.125, %v419_v12  ;;  %v898_v11 = vld [vmem:[#allocation12 + $0x98] sm:$0xff] }
 0x180   :  { %v882_v12 = vld [vmem:[#allocation12 + $0x18] sm:$0xff] }
 0x181   :  { %v427_v15 = vadd.f32 1e-05, %v423_v14  ;;  %1058 = vrsqrt.f32 %v426_v13  ;;  %v897_v13 = vld [vmem:[#allocation12 + $0x90] sm:$0xff] }
 0x182   :  { %v881_v14 = vld [vmem:[#allocation12 + $0x10] sm:$0xff] }
 0x183   :  { %1060 = vrsqrt.f32 %v427_v15  ;;  %v896_v15 = vld [vmem:[#allocation12 + $0x88] sm:$0xff] }
 0x188   :  { %v1055_v19 = vpop.eup %1054 }
 0x189   :  { %v1057_v20 = vpop.eup %1056 }
 0x18a   :  { %v436_v22 = vcombine.low %v1057_v20, %v1055_v19  ;;  %v640_v19 = vld [vmem:[%s1409_s8] sm:$0x3] }
 0x18b   :  { %v645_v20 = vrot.slane %v640_v19, %v1325_v33 }
 0x18c   :  { %v444_v27 = vrot.slane %v436_v22, %v1359_v23 }
 0x18e   :  { %v1059_v21 = vpop.eup %1058 }
 0x190   :  { %v1061_v24 = vpop.eup %1060 }
 0x191   :  { %v437_v26 = vcombine.low %v1059_v21, %v1061_v24  ;;  %v649_v21 = vrot.slane %v640_v19, %v1334_v52 }
 0x193   :  { %v451_v28 = vrot.slane %v437_v26, %v1359_v23 }
 0x195   :  { %v452_v29 = vcombine.low %v444_v27, %v451_v28 }
 0x197   :  { %v459_v35 = vrot.slane %v452_v29, %v1359_v23 }
 0x199   :  { %v461_v36 = vmul.f32 %v459_v35, %v358_v30 }
 0x19b   :  { %v470_v40 = vrot.slane %v461_v36, %v1334_v52  ;;  %v478_v41 = vrot.slane %v461_v36, %v1342_v61  ;;  %v466_v42 = vrot.slane %v461_v36, %v1325_v33  ;;  %v474_v43 = vrot.slane %v461_v36, %v1339_v57  ;;  %v910_v61 = vld [vmem:[#allocation12 + $0xf8] sm:$0xff]  ;;  %v909_v57 = vld [vmem:[#allocation12 + $0xf0] sm:$0xff] }
 0x19c   :  { %1002 = vmatprep.subr.mxu0 %v910_v61 }
 0x19d   :  { %v484_v45 = vmul.f32 %v470_v40, %v1350_v34  ;;  %v486_v46 = vmul.f32 %v478_v41, %v391_v49  ;;  %v483_v47 = vmul.f32 %v466_v42, %v1346_v25  ;;  %v485_v48 = vmul.f32 %v474_v43, %v1354_v44  ;;  %v893_v34 = vld [vmem:[#allocation12 + $0x70] sm:$0xff]  ;;  %v908_v49 = vld [vmem:[#allocation12 + $0xe8] sm:$0xff]  ;;  %v891_v44 = vld [vmem:[#allocation12 + $0x60] sm:$0xff] }
 0x19e   :  { %v892_v25 = vld [vmem:[#allocation12 + $0x68] sm:$0xff] }
 0x19f   :  { %v509_v50 = vadd.f32 %v495_v37, %v484_v45  ;;  %v511_v51 = vadd.f32 %v503_v31, %v486_v46  ;;  %v508_v53 = vadd.f32 %v491_v38, %v483_v47  ;;  %v510_v54 = vadd.f32 %v499_v39, %v485_v48 }
 0x1a1   :  { %716 = vmatprep.mubr.f32.mxu0 %v509_v50  ;;  %787 = vmatprep.mubr.f32.mxu1 %v511_v51 }
 0x1a2   :  { %717 = vmatmul.mubr.f32.vlgmr.msra.gmra.mxu0 %v508_v53  ;;  %788 = vmatmul.mubr.f32.vlgmr.msra.gmra.mxu1 %v510_v54 }
 0x1a3   :  { %1003 = vmatpush3.msra.mxu0 %v894_v55 }
 0x1a4   :  { %1004 = vmatprep.subr.mxu0 %v909_v57 }
 0x1a5   :  { %1005 = vmatpush3.msra.mxu0 %v893_v34 }
 0x1a6   :  { %1006 = vmatprep.subr.mxu0 %v908_v49 }
 0x1a7   :  { %1007 = vmatpush3.msra.mxu0 %v892_v25 }
 0x1a8   :  { %1008 = vmatprep.subr.mxu0 %v907_v56 }
 0x1a9   :  { %1009 = vmatpush3.msra.mxu0 %v891_v44 }
 0x1aa   :  { %1010 = vmatprep.subr.mxu0 %v906_v58 }
 0x1ab   :  { %1011 = vmatpush3.msra.mxu0 %v890_v59 }
 0x1ac   :  { %1012 = vmatprep.subr.mxu0 %v905_v60 }
 0x1ad   :  { %1013 = vmatpush3.msra.mxu0 %v889_v62 }
 0x1ae   :  { %1014 = vmatprep.subr.mxu0 %v904_v63 }
 0x1af   :  { %1015 = vmatpush3.msra.mxu0 %v888_v0 }
 0x1b0   :  { %1016 = vmatprep.subr.mxu0 %v903_v1 }
 0x1b1   :  { %1017 = vmatpush3.msra.mxu0 %v887_v2 }
 0x1b2   :  { %1018 = vmatprep.subr.mxu0 %v902_v3 }
 0x1b3   :  { %1019 = vmatpush3.msra.mxu0 %v886_v4 }
 0x1b4   :  { %1020 = vmatprep.subr.mxu0 %v901_v5 }
 0x1b5   :  { %1021 = vmatpush3.msra.mxu0 %v885_v6 }
 0x1b6   :  { %1022 = vmatprep.subr.mxu0 %v900_v7 }
 0x1b7   :  { %1023 = vmatpush3.msra.mxu0 %v884_v8 }
 0x1b8   :  { %1024 = vmatprep.subr.mxu0 %v899_v9  ;;  %v796_v9 = vld [vmem:[%s1410_s9] sm:$0x3] }
 0x1b9   :  { %1025 = vmatpush3.msra.mxu0 %v883_v10 }
 0x1ba   :  { %1026 = vmatprep.subr.mxu0 %v898_v11  ;;  %v797_v11 = vld [vmem:[%s1411_s10] sm:$0x3] }
 0x1bb   :  { %1027 = vmatpush3.msra.mxu0 %v882_v12 }
 0x1bc   :  { %1028 = vmatprep.subr.mxu0 %v897_v13 }
 0x1bd   :  { %1029 = vmatpush3.msra.mxu0 %v881_v14  ;;  %v870_v14 = vrot.slane %v797_v11, %v1325_v33 }
 0x1be   :  { %1030 = vmatprep.subr.mxu0 %v896_v15  ;;  %v874_v15 = vrot.slane %v797_v11, %v1334_v52 }
 0x1bf   :  { %1031 = vmatpush3.msra.mxu0 %v880_v16 }
 0x1c0   :  { %1032 = vmatprep.subr.mxu0 %v895_v17 }
 0x1c1   :  { %1033 = vmatpush3.msra.mxu0 %v879_v18 }
 0x262   :  { %v718_v22 = vpop.f32.mrf.mxu0  ;;  %v789_v24 = vpop.f32.mrf.mxu1 }
 0x263   :  { %v719_v26 = vadd.f32 %v718_v22, %v645_v20 }
 0x264   :  { %v720_v27 = vpop.f32.mrf.mxu0  ;;  %v791_v30 = vpop.f32.mrf.mxu1 }
 0x265   :  { %v790_v28 = vadd.f32 %v789_v24, %v719_v26  ;;  %v721_v29 = vadd.f32 %v720_v27, %v649_v21  ;;  %v1001_v21 = vld [vmem:[%s1413_s12] ss:$0 sm:$0xff] }
 0x267   :  { %v794_v32 = vmax.f32 %v790_v28, 0.0  ;;  %v792_v35 = vadd.f32 %v791_v30, %v721_v29 }
 0x269   :  { %v798_v36 = vrot.slane %v794_v32, 4  ;;  %v795_v37 = vmax.f32 %v792_v35, 0.0 }
 0x26b   :  { %v799_v31 = vadd.f32 %v798_v36, %v794_v32  ;;  %v804_v38 = vrot.slane %v795_v37, 4 }
 0x26d   :  { %v800_v39 = vrot.slane %v799_v31, 2  ;;  %v805_v40 = vadd.f32 %v804_v38, %v795_v37 }
 0x26f   :  { %v801_v41 = vadd.f32 %v800_v39, %v799_v31  ;;  %v806_v42 = vrot.slane %v805_v40, 2 }
 0x271   :  { %v802_v43 = vrot.slane %v801_v41, 1  ;;  %v807_v45 = vadd.f32 %v806_v42, %v805_v40 }
 0x273   :  { %v803_v46 = vadd.f32 %v802_v43, %v801_v41  ;;  %v808_v47 = vrot.slane %v807_v45, 1 }
 0x275   :  { %v810_v48 = vmul.f32 0.125, %v803_v46  ;;  %v809_v50 = vadd.f32 %v808_v47, %v807_v45 }
 0x277   :  { %v812_v51 = vsub.f32 %v794_v32, %v810_v48  ;;  %v811_v53 = vmul.f32 0.125, %v809_v50 }
 0x279   :  { %v814_v54 = vmul.f32 %v812_v51, %v812_v51  ;;  %v813_v61 = vsub.f32 %v795_v37, %v811_v53 }
 0x27b   :  { %v816_v55 = vrot.slane %v814_v54, 4  ;;  %v815_v57 = vmul.f32 %v813_v61, %v813_v61 }
 0x27d   :  { %v817_v34 = vadd.f32 %v816_v55, %v814_v54  ;;  %v822_v49 = vrot.slane %v815_v57, 4 }
 0x27f   :  { %v818_v25 = vrot.slane %v817_v34, 2  ;;  %v823_v56 = vadd.f32 %v822_v49, %v815_v57 }
 0x281   :  { %v819_v44 = vadd.f32 %v818_v25, %v817_v34  ;;  %v824_v58 = vrot.slane %v823_v56, 2 }
 0x283   :  { %v820_v59 = vrot.slane %v819_v44, 1  ;;  %v825_v60 = vadd.f32 %v824_v58, %v823_v56 }
 0x285   :  { %v821_v62 = vadd.f32 %v820_v59, %v819_v44  ;;  %v826_v63 = vrot.slane %v825_v60, 1 }
 0x287   :  { %v828_v0 = vmul.f32 0.125, %v821_v62  ;;  %v827_v1 = vadd.f32 %v826_v63, %v825_v60 }
 0x289   :  { %v830_v2 = vadd.f32 1e-05, %v828_v0  ;;  %v829_v3 = vmul.f32 0.125, %v827_v1 }
 0x28b   :  { %v831_v4 = vadd.f32 1e-05, %v829_v3  ;;  %1062 = vrsqrt.f32 %v830_v2 }
 0x28d   :  { %1064 = vrsqrt.f32 %v831_v4 }
 0x298   :  { %v1063_v5 = vpop.eup %1062 }
 0x29a   :  { %v1065_v6 = vpop.eup %1064 }
 0x29b   :  { %v836_v7 = vcombine.low %v1063_v5, %v1065_v6 }
 0x29d   :  { %v843_v8 = vrot.slane %v836_v7, %v1359_v23 }
 0x29f   :  { %v850_v10 = vrot.slane %v843_v8, %v1359_v23 }
 0x2a1   :  { %v852_v12 = vmul.f32 %v850_v10, %v796_v9 }
 0x2a3   :  { %v861_v13 = vrot.slane %v852_v12, %v1334_v52  ;;  %v857_v16 = vrot.slane %v852_v12, %v1325_v33 }
 0x2a5   :  { %v865_v17 = vmul.f32 %v861_v13, %v813_v61  ;;  %v864_v18 = vmul.f32 %v857_v16, %v812_v51 }
 0x2a7   :  { %v878_v19 = vadd.f32 %v874_v15, %v865_v17  ;;  %v877_v20 = vadd.f32 %v870_v14, %v864_v18 }
 0x2a9   :  { %982 = vmatprep.mubr.f32.mxu0 %v878_v19 }
 0x2aa   :  { %983 = vmatmul.mubr.f32.vlgmr.msra.gmra.mxu0 %v877_v20 }
 0x36a   :  { %v1034_v23 = vpop.f32.mrf.mxu0 }
 0x36c   :  { %v1035_v22 = vpop.f32.mrf.mxu0 }
 0x36d   :  { %v1036_v24 = vadd.f32 %v1035_v22, %v1034_v23 }
 0x36f   :  { %v985_v26 = vadd.f32 %v1036_v24, %v1001_v21 }
 0x371   :  { %v988_v27 = vmax.f32 %v985_v26, 0.0 }
 0x373   :  { %989 = vst [vmem:[%s1414_s13] sm:$0xff] %v988_v27 }
 0x374   :  { %994 = vsyncpa [#allocation3], 1 }
 0x375   :  { %995 = vsyncpa [#allocation5], 1 }
 0x376   :  { %996 = vsyncpa [#allocation8], 1 }
 0x377   :  { %997 = vsyncpa [#allocation11], 1 }

</bundles_post_ra>
